<compile_context>
chip_gen: v7x
topology: tpu7x:2x2x1
jax: 0.10.0
libtpu: 0.0.40
codegen_flags: <defaults>
</compile_context>

<pallas_src>
import math

import jax
import jax.numpy as jnp
from jax import lax
from jax.experimental import pallas as pl
from jax.experimental.pallas import tpu as pltpu


def _round_up(x, m):
    return ((x + m - 1) // m) * m


# ----------------------------- fused Pallas kernel -----------------------------

def _fused_net_kernel(feat_ref, h0_ref, c0_ref, wx_ref, whh_ref, b_ref,
                      w2_ref, b2_ref, out_ref, h_ref, c_ref, gx_ref):
    """Whole T-step rollout for one batch block in a single kernel invocation.

    feat_ref : (T, Bb, K)   flattened obs sequence (f32; cast to wx dtype in-kernel)
    gx_ref   : (T, Bb, 4Hp) VMEM scratch holding the hoisted x-path gates
    h_ref/c_ref : final recurrent state outputs (padded width Hp)

    Gate layout: 4 blocks of width Hp, PyTorch order (i, f, g, o); real values
    live in the first H columns of each block; padded gate columns have zero
    weight and zero bias so padded h/c lanes stay exactly 0.
    """
    T, Bb, K = feat_ref.shape
    Hp = h0_ref.shape[-1]
    G = 4 * Hp

    # ---- (1) Hoisted x-projection: ONE batched MXU matmul over all T*Bb rows.
    #      Removes the K reduction from the sequential critical path and raises
    #      MXU row utilization from B to T*B.
    feat2d = feat_ref[...].reshape(T * Bb, K).astype(wx_ref.dtype)
    gates_x = jnp.dot(feat2d, wx_ref[...], preferred_element_type=jnp.float32)
    gx_ref[...] = gates_x.reshape(T, Bb, G) + b_ref[...]      # bias folded once

    whh = whh_ref[...]          # (Hp, G)  f32
    w2 = w2_ref[...]            # (Hp, Ap) f32
    b2 = b2_ref[...]            # (1, Ap)  f32

    # ---- (2) Sequential recurrence: per step only a tiny (Bb,Hp)x(Hp,4Hp)
    #      matmul + gate elementwise + fc2.  h/c are carried in registers
    #      (no per-step VMEM carry, no t==0 init branch).
    def step(t, carry):
        h, c = carry
        gates = gx_ref[t] + jnp.dot(h, whh, preferred_element_type=jnp.float32)
        i = jax.nn.sigmoid(gates[:, 0 * Hp:1 * Hp])
        f = jax.nn.sigmoid(gates[:, 1 * Hp:2 * Hp])
        g = jnp.tanh(gates[:, 2 * Hp:3 * Hp])
        o = jax.nn.sigmoid(gates[:, 3 * Hp:4 * Hp])
        c_new = f * c + i * g
        h_new = o * jnp.tanh(c_new)
        out_ref[t] = (jnp.dot(h_new, w2, preferred_element_type=jnp.float32) + b2)
        return h_new, c_new

    h_fin, c_fin = lax.fori_loop(0, T, step, (h0_ref[...], c0_ref[...]),
                                 unroll=True)
    h_ref[...] = h_fin
    c_ref[...] = c_fin


def _fused_call(fused, feat_seq, h0, c0, batch_block=None):
    """Run the fused kernel over a (T, B, K) feature sequence.

    The single grid axis is over batch blocks ("parallel"): independent LSTM
    rows, so on v7x a B>=16 call uses both TensorCores.  Weights use constant
    index_maps and stay VMEM-resident across blocks.
    """
    T, B, K = feat_seq.shape
    Hp, Ap = fused["Hp"], fused["Ap"]
    G = 4 * Hp
    if batch_block is None:
        # Split into two parallel blocks (one per v7x TC) when batch allows it.
        batch_block = B // 2 if (B >= 16 and B % 16 == 0) else B
    assert B % batch_block == 0
    nb = B // batch_block

    return pl.pallas_call(
        _fused_net_kernel,
        out_shape=(jax.ShapeDtypeStruct((T, B, Ap), jnp.float32),   # per-step out
                   jax.ShapeDtypeStruct((B, Hp), jnp.float32),      # final h
                   jax.ShapeDtypeStruct((B, Hp), jnp.float32)),     # final c
        grid=(nb,),
        in_specs=[
            pl.BlockSpec((T, batch_block, K), lambda b: (0, b, 0)),  # obs features
            pl.BlockSpec((batch_block, Hp), lambda b: (b, 0)),       # h0
            pl.BlockSpec((batch_block, Hp), lambda b: (b, 0)),       # c0
            pl.BlockSpec((K, G),   lambda b: (0, 0)),                # folded x weight
            pl.BlockSpec((Hp, G),  lambda b: (0, 0)),                # recurrent weight
            pl.BlockSpec((1, G),   lambda b: (0, 0)),                # folded bias
            pl.BlockSpec((Hp, Ap), lambda b: (0, 0)),                # fc2 weight (padded)
            pl.BlockSpec((1, Ap),  lambda b: (0, 0)),                # fc2 bias (padded)
        ],
        out_specs=(
            pl.BlockSpec((T, batch_block, Ap), lambda b: (0, b, 0)),
            pl.BlockSpec((batch_block, Hp), lambda b: (b, 0)),
            pl.BlockSpec((batch_block, Hp), lambda b: (b, 0)),
        ),
        scratch_shapes=[pltpu.VMEM((T, batch_block, G), jnp.float32)],  # hoisted gates
        # Footprint today is ~1-2 MiB; if the real SE-ResNet backbone inflates K,
        # set vmem_limit_bytes here and re-budget for v7x (64 MiB VMEM).
        compiler_params=pltpu.CompilerParams(dimension_semantics=("parallel",)),
    )(feat_seq, h0, c0, fused["w_x"], fused["w_hh"], fused["b"],
      fused["w2"], fused["b2"])


# ----------------------------- parameters -----------------------------

def _uniform(key, shape, bound):
    return jax.random.uniform(key, shape, jnp.float32, -bound, bound)


def init_params(key, h, w, a):
    """Raw torch-equivalent parameters (uniform +-1/sqrt(fan_in) init)."""
    hidden = 4 * a           # Recurrent hidden_dim = 4 * a
    fc_in = 4 * h * w * a    # Net.fc = Linear(4*h*w*a, a)
    ks = jax.random.split(key, 10)
    p = {}
    p["fc_w_t"] = _uniform(ks[0], (fc_in, a), 1.0 / math.sqrt(fc_in))
    p["fc_b"] = _uniform(ks[1], (a,), 1.0 / math.sqrt(fc_in))
    p["fc1_w_t"] = _uniform(ks[2], (a, hidden), 1.0 / math.sqrt(a))
    p["fc1_b"] = _uniform(ks[3], (hidden,), 1.0 / math.sqrt(a))
    bnd = 1.0 / math.sqrt(hidden)
    p["w_ih_t"] = _uniform(ks[4], (hidden, 4 * hidden), bnd)   # = W_ih.T
    p["w_hh_t"] = _uniform(ks[5], (hidden, 4 * hidden), bnd)   # = W_hh.T
    p["b_ih"] = _uniform(ks[6], (4 * hidden,), bnd)
    p["b_hh"] = _uniform(ks[7], (4 * hidden,), bnd)
    p["fc2_w_t"] = _uniform(ks[8], (hidden, a), bnd)
    p["fc2_b"] = _uniform(ks[9], (a,), bnd)
    return p


def _pad_gate_cols(w, H, Hp):
    """(K, 4H) gate-ordered weight/bias -> (K, 4Hp); gate k placed at k*Hp."""
    K = w.shape[0]
    out = jnp.zeros((K, 4 * Hp), jnp.float32)
    for k in range(4):
        out = out.at[:, k * Hp:k * Hp + H].set(w[:, k * H:(k + 1) * H])
    return out


def fold_params(raw, a, x_dtype=jnp.float32):
    """One-time algebraic fold + lane padding of the raw parameters.

    x_dtype: storage dtype of the big folded x-path weight (the only non-trivial
    HBM transfer).  Use jnp.bfloat16 on v6e/v7x; accumulation stays f32.
    """
    H = 4 * a
    Hp = _round_up(H, 32)      # gate block width -> 4*Hp is a multiple of 128
    Ap = _round_up(a, 128)     # lane-dense fc2 output width
    # Exact fold (no nonlinearity between fc, fc1 and the LSTM input projection):
    w_x = raw["fc_w_t"] @ raw["fc1_w_t"] @ raw["w_ih_t"]                   # (K, 4H)
    b_x = ((raw["fc_b"] @ raw["fc1_w_t"] + raw["fc1_b"]) @ raw["w_ih_t"]
           + raw["b_ih"] + raw["b_hh"])                                    # (4H,)
    w_hh = jnp.zeros((Hp, 4 * H), jnp.float32).at[:H, :].set(raw["w_hh_t"])
    return {
        "w_x":  _pad_gate_cols(w_x, H, Hp).astype(x_dtype),   # (K, 4*Hp)
        "w_hh": _pad_gate_cols(w_hh, H, Hp),                  # (Hp, 4*Hp)  f32
        "b":    _pad_gate_cols(b_x[None, :], H, Hp),          # (1, 4*Hp)   f32
        "w2":   jnp.zeros((Hp, Ap), jnp.float32).at[:H, :a].set(raw["fc2_w_t"]),
        "b2":   jnp.zeros((1, Ap), jnp.float32).at[0, :a].set(raw["fc2_b"]),
        "a": a, "H": H, "Hp": Hp, "Ap": Ap,
    }


# ----------------------------- forward -----------------------------

def _prep_state(x, B, Hp):
    if x is None:
        return jnp.zeros((B, Hp), jnp.float32)
    x = jnp.asarray(x, jnp.float32).reshape(B, -1)    # accepts (B,Hp), (B,H), (B,1,H)
    w = x.shape[-1]
    if w == Hp:
        return x
    return jnp.pad(x, ((0, 0), (0, Hp - w)))


def net_forward(fused, obs, state=None):
    """Single Net.forward step: obs (B,C,h,w) -> (actions (B,a), state dict).

    State is kept as padded (B, Hp) end-to-end (columns [:H] == torch's (B,1,H)
    state); padded columns are exactly zero.
    """
    B = obs.shape[0]
    Hp, a = fused["Hp"], fused["a"]
    feat = obs.reshape(1, B, -1).astype(jnp.float32)
    h0 = _prep_state(None if state is None else state["h"], B, Hp)
    c0 = _prep_state(None if state is None else state["c"], B, Hp)
    out, h, c = _fused_call(fused, feat, h0, c0)
    return out[0, :, :a], {"h": h, "c": c}


def net_forward_rollout(fused, obs_seq, state=None, batch_block=None):
    """T sequential Net.forward calls in ONE pallas_call (single grid step,
    x-projection batched over T*B, timestep loop inside the kernel)."""
    T, B = obs_seq.shape[:2]
    Hp, a = fused["Hp"], fused["a"]
    feat = obs_seq.reshape(T, B, -1).astype(jnp.float32)
    h0 = _prep_state(None if state is None else state["h"], B, Hp)
    c0 = _prep_state(None if state is None else state["c"], B, Hp)
    out, h, c = _fused_call(fused, feat, h0, c0, batch_block=batch_block)
    return out[:, :, :a], {"h": h, "c": c}


# ----------------------------- pure-JAX reference (unfused) -----------------------------

def ref_step(raw, feat, h0, c0, a):
    H = 4 * a
    x = feat @ raw["fc_w_t"] + raw["fc_b"]
    s = x @ raw["fc1_w_t"] + raw["fc1_b"]
    gates = s @ raw["w_ih_t"] + h0 @ raw["w_hh_t"] + raw["b_ih"] + raw["b_hh"]
    i = jax.nn.sigmoid(gates[:, :H])
    f = jax.nn.sigmoid(gates[:, H:2 * H])
    g = jnp.tanh(gates[:, 2 * H:3 * H])
    o = jax.nn.sigmoid(gates[:, 3 * H:])
    c1 = f * c0 + i * g
    h1 = o * jnp.tanh(c1)
    return h1 @ raw["fc2_w_t"] + raw["fc2_b"], h1, c1


# ----------------------------- demo -----------------------------

if __name__ == "__main__":
    # state_shape=(12, 16) -> h=4, w=16; action dim a=4; hidden = 4*a = 16.
    state_shape = (12, 16)
    a = 4
    h, w = state_shape[0] // 3, state_shape[1]
    B, T = 8, 8
    H = 4 * a

    key = jax.random.PRNGKey(0)
    kp, ko, ks = jax.random.split(key, 3)
    raw = init_params(kp, h, w, a)
    fused = fold_params(raw, a)                          # f32 weights (exact check)
    fused_bf16 = fold_params(raw, a, x_dtype=jnp.bfloat16)  # v6e/v7x variant

    obs = jax.random.normal(ko, (B, 4 * a, h, w), jnp.float32)

    # --- single-step forward (state=None, then reusing the returned state) ---
    out1, st1 = net_forward(fused, obs, state=None)
    out1 = jax.block_until_ready(out1)
    out2, st2 = net_forward(fused, obs, state=st1)
    out2 = jax.block_until_ready(out2)
    assert out1.shape == (B, a) and out2.shape == (B, a)
    assert st1["h"].shape == (B, fused["Hp"]) and st1["c"].shape == (B, fused["Hp"])

    # --- check the fused/folded kernel against the unfused pure-JAX reference ---
    feat = obs.reshape(B, -1)
    r_out1, r_h1, r_c1 = ref_step(raw, feat, jnp.zeros((B, H)), jnp.zeros((B, H)), a)
    r_out2, _, _ = ref_step(raw, feat, r_h1, r_c1, a)
    assert jnp.allclose(out1, r_out1, atol=1e-3, rtol=1e-3)
    assert jnp.allclose(out2, r_out2, atol=1e-3, rtol=1e-3)
    assert jnp.allclose(st1["h"][:, :H], r_h1, atol=1e-3, rtol=1e-3)
    assert jnp.allclose(st1["c"][:, :H], r_c1, atol=1e-3, rtol=1e-3)

    # --- T-step rollout: ONE pallas_call, hoisted x-matmul + in-kernel fori_loop ---
    obs_seq = jax.random.normal(ks, (T, B, 4 * a, h, w), jnp.float32)
    outs, stT = net_forward_rollout(fused, obs_seq, state=None)
    outs = jax.block_until_ready(outs)
    assert outs.shape == (T, B, a)

    # rollout must match T sequential single-step calls
    st = None
    step_outs = []
    for t in range(T):
        o, st = net_forward(fused, obs_seq[t], state=st)
        step_outs.append(o)
    step_outs = jnp.stack(step_outs)
    assert jnp.allclose(outs, step_outs, atol=1e-5, rtol=1e-5)
    assert jnp.allclose(stT["h"], st["h"], atol=1e-5, rtol=1e-5)
    assert jnp.allclose(stT["c"], st["c"], atol=1e-5, rtol=1e-5)

    # --- bf16 x-path weight (v6e/v7x): same kernel, looser tolerance ---
    outs_bf, stT_bf = net_forward_rollout(fused_bf16, obs_seq, state=None)
    outs_bf = jax.block_until_ready(outs_bf)
    assert jnp.allclose(outs_bf, outs, atol=1e-2, rtol=1e-2)
    assert jnp.allclose(stT_bf["h"], stT["h"], atol=1e-2, rtol=1e-2)

    # --- batch=16: default splits into 2 "parallel" batch blocks (v7x: 2 TCs);
    #     must match the single-block run exactly. ---
    obs_seq16 = jnp.concatenate([obs_seq, obs_seq + 0.5], axis=1)   # (T, 16, C, h, w)
    outs16a, st16a = net_forward_rollout(fused, obs_seq16, state=None)          # nb = 2
    outs16b, st16b = net_forward_rollout(fused, obs_seq16, state=None,
                                         batch_block=16)                        # nb = 1
    outs16a = jax.block_until_ready(outs16a)
    assert jnp.allclose(outs16a, outs16b, atol=1e-5, rtol=1e-5)
    assert jnp.allclose(st16a["h"], st16b["h"], atol=1e-5, rtol=1e-5)

    print("KERNEL_OK")
</pallas_src>

<mosaic_0001>
module attributes {stable_mosaic.version = 11 : i64} {
  func.func @_fused_net_kernel(%arg0: i32, %arg1: memref<1x8x1024xf32, #tpu.memory_space<vmem>>, %arg2: memref<8x32xf32, #tpu.memory_space<vmem>>, %arg3: memref<8x32xf32, #tpu.memory_space<vmem>>, %arg4: memref<1024x128xf32, #tpu.memory_space<vmem>>, %arg5: memref<32x128xf32, #tpu.memory_space<vmem>>, %arg6: memref<1x128xf32, #tpu.memory_space<vmem>>, %arg7: memref<32x128xf32, #tpu.memory_space<vmem>>, %arg8: memref<1x128xf32, #tpu.memory_space<vmem>>, %arg9: memref<1x8x128xf32, #tpu.memory_space<vmem>>, %arg10: memref<8x32xf32, #tpu.memory_space<vmem>>, %arg11: memref<8x32xf32, #tpu.memory_space<vmem>>, %arg12: memref<1x8x128xf32, #tpu.memory_space<vmem>>) attributes {dimension_semantics = [#tpu.dimension_semantics<parallel>], iteration_bounds = array<i64: 1>, scalar_prefetch = 0 : i64, scratch_operands = 1 : i64, tpu.core_type = #tpu.core_type<tc>, window_params = [{transform_indices = @transform_0, window_bounds = array<i64: 1, 8, 1024>}, {transform_indices = @transform_1, window_bounds = array<i64: 8, 32>}, {transform_indices = @transform_2, window_bounds = array<i64: 8, 32>}, {pipeline_mode = #tpu.pipeline_mode<synchronous>, transform_indices = @transform_3, window_bounds = array<i64: 1024, 128>}, {pipeline_mode = #tpu.pipeline_mode<synchronous>, transform_indices = @transform_4, window_bounds = array<i64: 32, 128>}, {pipeline_mode = #tpu.pipeline_mode<synchronous>, transform_indices = @transform_5, window_bounds = array<i64: 1, 128>}, {pipeline_mode = #tpu.pipeline_mode<synchronous>, transform_indices = @transform_6, window_bounds = array<i64: 32, 128>}, {pipeline_mode = #tpu.pipeline_mode<synchronous>, transform_indices = @transform_7, window_bounds = array<i64: 1, 128>}, {transform_indices = @transform_8, window_bounds = array<i64: 1, 8, 128>}, {transform_indices = @transform_9, window_bounds = array<i64: 8, 32>}, {transform_indices = @transform_10, window_bounds = array<i64: 8, 32>}]} {
    %c0 = arith.constant 0 : index
    %c0_0 = arith.constant 0 : index
    %c0_1 = arith.constant 0 : index
    %0 = vector.load %arg1[%c0, %c0_0, %c0_1] : memref<1x8x1024xf32, #tpu.memory_space<vmem>>, vector<1x8x1024xf32>
    %1 = vector.shape_cast %0 : vector<1x8x1024xf32> to vector<8x1024xf32>
    %c0_2 = arith.constant 0 : index
    %c0_3 = arith.constant 0 : index
    %2 = vector.load %arg4[%c0_2, %c0_3] : memref<1024x128xf32, #tpu.memory_space<vmem>>, vector<1024x128xf32>
    %cst = arith.constant dense<0.000000e+00> : vector<8x128xf32>
    %3 = tpu.matmul %1, %2, %cst {dimension_numbers = #tpu.dot_dimension_numbers<[1], [0], [0], [1], [0, 0, 1, 1], [], []>} : vector<8x1024xf32>, vector<1024x128xf32>, vector<8x128xf32> -> vector<8x128xf32>
    %4 = vector.shape_cast %3 : vector<8x128xf32> to vector<1x8x128xf32>
    %c0_4 = arith.constant 0 : index
    %c0_5 = arith.constant 0 : index
    %5 = vector.load %arg6[%c0_4, %c0_5] : memref<1x128xf32, #tpu.memory_space<vmem>>, vector<1x128xf32>
    %6 = vector.shape_cast %5 : vector<1x128xf32> to vector<1x1x128xf32>
    %7 = vector.broadcast %6 : vector<1x1x128xf32> to vector<1x8x128xf32>
    %8 = arith.addf %4, %7 : vector<1x8x128xf32>
    %c0_6 = arith.constant 0 : index
    %c0_7 = arith.constant 0 : index
    %c0_8 = arith.constant 0 : index
    %9 = vector.load %arg12[%c0_6, %c0_7, %c0_8] : memref<1x8x128xf32, #tpu.memory_space<vmem>>, vector<1x8x128xf32>
    tpu.vector_store %arg12[%c0_6, %c0_7, %c0_8], %8 {strides = array<i32>} : memref<1x8x128xf32, #tpu.memory_space<vmem>>, vector<1x8x128xf32>,
    %c0_9 = arith.constant 0 : index
    %c0_10 = arith.constant 0 : index
    %10 = vector.load %arg5[%c0_9, %c0_10] : memref<32x128xf32, #tpu.memory_space<vmem>>, vector<32x128xf32>
    %c0_11 = arith.constant 0 : index
    %c0_12 = arith.constant 0 : index
    %11 = vector.load %arg7[%c0_11, %c0_12] : memref<32x128xf32, #tpu.memory_space<vmem>>, vector<32x128xf32>
    %c0_13 = arith.constant 0 : index
    %c0_14 = arith.constant 0 : index
    %12 = vector.load %arg8[%c0_13, %c0_14] : memref<1x128xf32, #tpu.memory_space<vmem>>, vector<1x128xf32>
    %c0_15 = arith.constant 0 : index
    %c0_16 = arith.constant 0 : index
    %13 = vector.load %arg2[%c0_15, %c0_16] : memref<8x32xf32, #tpu.memory_space<vmem>>, vector<8x32xf32>
    %c0_17 = arith.constant 0 : index
    %c0_18 = arith.constant 0 : index
    %14 = vector.load %arg3[%c0_17, %c0_18] : memref<8x32xf32, #tpu.memory_space<vmem>>, vector<8x32xf32>
    %c0_i32 = arith.constant 0 : i32
    %15 = arith.index_cast %c0_i32 : i32 to index
    %c0_19 = arith.constant 0 : index
    %c0_20 = arith.constant 0 : index
    %16 = vector.load %arg12[%15, %c0_19, %c0_20] : memref<1x8x128xf32, #tpu.memory_space<vmem>>, vector<1x8x128xf32>
    %17 = vector.shape_cast %16 : vector<1x8x128xf32> to vector<8x128xf32>
    %cst_21 = arith.constant dense<0.000000e+00> : vector<8x128xf32>
    %18 = tpu.matmul %13, %10, %cst_21 {dimension_numbers = #tpu.dot_dimension_numbers<[1], [0], [0], [1], [0, 0, 1, 1], [], []>} : vector<8x32xf32>, vector<32x128xf32>, vector<8x128xf32> -> vector<8x128xf32>
    %19 = arith.addf %17, %18 : vector<8x128xf32>
    %20 = vector.extract_strided_slice %19 {offsets = [0, 0], sizes = [8, 32], strides = [1, 1]} : vector<8x128xf32> to vector<8x32xf32>
    %21 = arith.negf %20 : vector<8x32xf32>
    %22 = math.exp %21 : vector<8x32xf32>
    %cst_22 = arith.constant 1.000000e+00 : f32
    %23 = vector.broadcast %cst_22 : f32 to vector<8x32xf32>
    %24 = arith.addf %23, %22 : vector<8x32xf32>
    %25 = arith.divf %23, %24 : vector<8x32xf32>
    %26 = vector.extract_strided_slice %19 {offsets = [0, 32], sizes = [8, 32], strides = [1, 1]} : vector<8x128xf32> to vector<8x32xf32>
    %27 = arith.negf %26 : vector<8x32xf32>
    %28 = math.exp %27 : vector<8x32xf32>
    %cst_23 = arith.constant 1.000000e+00 : f32
    %29 = vector.broadcast %cst_23 : f32 to vector<8x32xf32>
    %30 = arith.addf %29, %28 : vector<8x32xf32>
    %31 = arith.divf %29, %30 : vector<8x32xf32>
    %32 = vector.extract_strided_slice %19 {offsets = [0, 64], sizes = [8, 32], strides = [1, 1]} : vector<8x128xf32> to vector<8x32xf32>
    %33 = math.tanh %32 : vector<8x32xf32>
    %34 = vector.extract_strided_slice %19 {offsets = [0, 96], sizes = [8, 32], strides = [1, 1]} : vector<8x128xf32> to vector<8x32xf32>
    %35 = arith.negf %34 : vector<8x32xf32>
    %36 = math.exp %35 : vector<8x32xf32>
    %cst_24 = arith.constant 1.000000e+00 : f32
    %37 = vector.broadcast %cst_24 : f32 to vector<8x32xf32>
    %38 = arith.addf %37, %36 : vector<8x32xf32>
    %39 = arith.divf %37, %38 : vector<8x32xf32>
    %40 = arith.mulf %31, %14 : vector<8x32xf32>
    %41 = arith.mulf %25, %33 : vector<8x32xf32>
    %42 = arith.addf %40, %41 : vector<8x32xf32>
    %43 = math.tanh %42 : vector<8x32xf32>
    %44 = arith.mulf %39, %43 : vector<8x32xf32>
    %cst_25 = arith.constant dense<0.000000e+00> : vector<8x128xf32>
    %45 = tpu.matmul %44, %11, %cst_25 {dimension_numbers = #tpu.dot_dimension_numbers<[1], [0], [0], [1], [0, 0, 1, 1], [], []>} : vector<8x32xf32>, vector<32x128xf32>, vector<8x128xf32> -> vector<8x128xf32>
    %46 = vector.broadcast %12 : vector<1x128xf32> to vector<8x128xf32>
    %47 = arith.addf %45, %46 : vector<8x128xf32>
    %48 = arith.index_cast %c0_i32 : i32 to index
    %c0_26 = arith.constant 0 : index
    %c0_27 = arith.constant 0 : index
    %49 = vector.load %arg9[%48, %c0_26, %c0_27] : memref<1x8x128xf32, #tpu.memory_space<vmem>>, vector<1x8x128xf32>
    %50 = vector.shape_cast %49 : vector<1x8x128xf32> to vector<8x128xf32>
    %51 = vector.shape_cast %47 : vector<8x128xf32> to vector<1x8x128xf32>
    tpu.vector_store %arg9[%48, %c0_26, %c0_27], %51 {strides = array<i32>} : memref<1x8x128xf32, #tpu.memory_space<vmem>>, vector<1x8x128xf32>,
    %c1_i32 = arith.constant 1 : i32
    %c0_28 = arith.constant 0 : index
    %c0_29 = arith.constant 0 : index
    %52 = vector.load %arg10[%c0_28, %c0_29] : memref<8x32xf32, #tpu.memory_space<vmem>>, vector<8x32xf32>
    tpu.vector_store %arg10[%c0_28, %c0_29], %44 {strides = array<i32>} : memref<8x32xf32, #tpu.memory_space<vmem>>, vector<8x32xf32>,
    %c0_30 = arith.constant 0 : index
    %c0_31 = arith.constant 0 : index
    %53 = vector.load %arg11[%c0_30, %c0_31] : memref<8x32xf32, #tpu.memory_space<vmem>>, vector<8x32xf32>
    tpu.vector_store %arg11[%c0_30, %c0_31], %42 {strides = array<i32>} : memref<8x32xf32, #tpu.memory_space<vmem>>, vector<8x32xf32>,
    return
  }
  func.func @transform_0(%arg0: i32) -> (i32, i32, i32) {
    %c0_i32 = arith.constant 0 : i32
    %c0_i32_0 = arith.constant 0 : i32
    %c0_i32_1 = arith.constant 0 : i32
    return %c0_i32, %arg0, %c0_i32_0 : i32, i32, i32
  }
  func.func @transform_1(%arg0: i32) -> (i32, i32) {
    %c0_i32 = arith.constant 0 : i32
    %c0_i32_0 = arith.constant 0 : i32
    return %arg0, %c0_i32 : i32, i32
  }
  func.func @transform_2(%arg0: i32) -> (i32, i32) {
    %c0_i32 = arith.constant 0 : i32
    %c0_i32_0 = arith.constant 0 : i32
    return %arg0, %c0_i32 : i32, i32
  }
  func.func @transform_3(%arg0: i32) -> (i32, i32) {
    %c0_i32 = arith.constant 0 : i32
    %c0_i32_0 = arith.constant 0 : i32
    %c0_i32_1 = arith.constant 0 : i32
    return %c0_i32, %c0_i32_0 : i32, i32
  }
  func.func @transform_4(%arg0: i32) -> (i32, i32) {
    %c0_i32 = arith.constant 0 : i32
    %c0_i32_0 = arith.constant 0 : i32
    %c0_i32_1 = arith.constant 0 : i32
    return %c0_i32, %c0_i32_0 : i32, i32
  }
  func.func @transform_5(%arg0: i32) -> (i32, i32) {
    %c0_i32 = arith.constant 0 : i32
    %c0_i32_0 = arith.constant 0 : i32
    %c0_i32_1 = arith.constant 0 : i32
    return %c0_i32, %c0_i32_0 : i32, i32
  }
  func.func @transform_6(%arg0: i32) -> (i32, i32) {
    %c0_i32 = arith.constant 0 : i32
    %c0_i32_0 = arith.constant 0 : i32
    %c0_i32_1 = arith.constant 0 : i32
    return %c0_i32, %c0_i32_0 : i32, i32
  }
  func.func @transform_7(%arg0: i32) -> (i32, i32) {
    %c0_i32 = arith.constant 0 : i32
    %c0_i32_0 = arith.constant 0 : i32
    %c0_i32_1 = arith.constant 0 : i32
    return %c0_i32, %c0_i32_0 : i32, i32
  }
  func.func @transform_8(%arg0: i32) -> (i32, i32, i32) {
    %c0_i32 = arith.constant 0 : i32
    %c0_i32_0 = arith.constant 0 : i32
    %c0_i32_1 = arith.constant 0 : i32
    return %c0_i32, %arg0, %c0_i32_0 : i32, i32, i32
  }
  func.func @transform_9(%arg0: i32) -> (i32, i32) {
    %c0_i32 = arith.constant 0 : i32
    %c0_i32_0 = arith.constant 0 : i32
    return %arg0, %c0_i32 : i32, i32
  }
  func.func @transform_10(%arg0: i32) -> (i32, i32) {
    %c0_i32 = arith.constant 0 : i32
    %c0_i32_0 = arith.constant 0 : i32
    return %arg0, %c0_i32 : i32, i32
  }
}

</mosaic_0001>

<bundles_post_ra>
// kernel: tpu_custom_call.1
= control target key start
LH: loop header
LB: loop body
LE: loop exit
PB: predicated region body
PF: predicated region fallthrough
CT: control target
= control target key end

     0   :  { %16 = vsyncpa [#allocation4], 0  ;;  %s1556_s0 = inlined_call_operand.hbm [shape: f32[1,8,1024], index: 0, kind: input, shape index: {}]   ;;  %s1557_s1 = inlined_call_operand.hbm [shape: f32[8,32], index: 1, kind: input, shape index: {}]   ;;  %s1558_s2 = inlined_call_operand.hbm [shape: f32[8,32], index: 2, kind: input, shape index: {}]   ;;  %s1559_s3 = inlined_call_operand.hbm [shape: f32[1024,128], index: 3, kind: input, shape index: {}]   ;;  %s1560_s4 = inlined_call_operand.hbm [shape: f32[32,128], index: 4, kind: input, shape index: {}]   ;;  %s1561_s5 = inlined_call_operand.vmem [shape: f32[1,128], index: 5, kind: input, shape index: {}]   ;;  %s1562_s6 = inlined_call_operand.hbm [shape: f32[32,128], index: 6, kind: input, shape index: {}]   ;;  %s1563_s7 = inlined_call_operand.vmem [shape: f32[1,128], index: 7, kind: input, shape index: {}]   ;;  %s1564_s8 = inlined_call_operand.hbm [shape: f32[1,8,128], index: 8, kind: output, shape index: {0}]   ;;  %s1565_s9 = inlined_call_operand.hbm [shape: f32[8,32], index: 9, kind: output, shape index: {1}]   ;;  %s1566_s10 = inlined_call_operand.hbm [shape: f32[8,32], index: 10, kind: output, shape index: {2}]  }
   0x1   :  { %17 = vsyncpa [#allocation7], 0 }
   0x2   :  { %18 = vsyncpa [#allocation10], 0 }
   0x3   :  { %19 = vsyncpa [#allocation13], 0 }
   0x4   :  { %20 = vsyncpa [#allocation5], 0 }
   0x5   :  { %21 = vsyncpa [#allocation16], 0  ;;  %s1336_s13 = smov [#allocation6]   ;;  %s1337_s15 = smov [#allocation9]  }
   0x6   :  { %s38_s14 = sshll.u32 %s1336_s13, 4  ;;  %s57_s16 = sshll.u32 %s1337_s15, 4  ;;  %s39_s14 = int_to_ptr.vmem [resolvable:$true] %s38_s14  ;;  %s1408_s16 = int_to_ptr.vmem [resolvable:$true] %s57_s16 }
   0x7   :  { %s1126_s19 = scalar_lea.hbm %s1557_s1, 128 }
   0x8   :  { %p1127_p0 = scmp.ne.s32.totalorder %s1557_s1, %s1126_s19  ;;  %p1130_p1 = scmp.lt.u32.totalorder %s1126_s19, %s1557_s1 }
   0xa   :  { %p1132_p2 = pnand %p1130_p1, %p1127_p0 }
   0xc   :  { %1135 = shalt.err (!%p1132_p2)
}
   0xd   :  { %s1136_s24 = scalar_lea.vmem %s39_s14, 128  ;;  %p1141_p4 = scmp.lt.s32.totalorder %s39_s14, %s39_s14 }
   0xe   :  { %p1137_p3 = scmp.ne.s32.totalorder %s39_s14, %s1136_s24  ;;  %p1142_p5 = scmp.lt.s32.totalorder %s1136_s24, %s1136_s24 }
  0x10   :  { %p1143_p6 = por %p1142_p5, %p1141_p4 }
  0x12   :  { %p1144_p7 = pnand %p1143_p6, %p1137_p3 }
  0x14   :  { %1147 = shalt.err (!%p1144_p7)
}
  0x15   :  { %41 = dma.hbm_to_vmem [thread:$0]  %s1557_s1, 128, %s39_s14, [#allocation7]  }
  0x16   :  { %s1148_s29 = scalar_lea.hbm %s1559_s3, 16384 }
  0x17   :  { %p1149_p8 = scmp.ne.s32.totalorder %s1559_s3, %s1148_s29  ;;  %p1152_p9 = scmp.lt.u32.totalorder %s1148_s29, %s1559_s3 }
  0x19   :  { %p1154_p10 = pnand %p1152_p9, %p1149_p8 }
  0x1b   :  { %1157 = shalt.err (!%p1154_p10)
}
  0x1c   :  { %s1158_s15 = scalar_lea.vmem %s1408_s16, 16384  ;;  %p1163_p12 = scmp.lt.s32.totalorder %s1408_s16, %s1408_s16 }
  0x1d   :  { %p1159_p11 = scmp.ne.s32.totalorder %s1408_s16, %s1158_s15  ;;  %p1164_p13 = scmp.lt.s32.totalorder %s1158_s15, %s1158_s15 }
  0x1f   :  { %p1165_p0 = por %p1164_p13, %p1163_p12 }
  0x21   :  { %p1166_p1 = pnand %p1165_p0, %p1159_p11 }
  0x23   :  { %1169 = shalt.err (!%p1166_p1)
}
  0x24   :  { %s1338_s1 = smov 128   ;;  %s1339_s14 = smov 8  }
  0x25   :  { %63 = dma.hbm_to_vmem [thread:$0]  %s1559_s3, 16384, %s1408_s16, [#allocation10], %s1338_s1, %s1338_s1, %s1339_s14  }
  0x26   :  { %s1340_s19 = smov [#allocation3]   ;;  %s1341_s21 = smov [#allocation8]  }
  0x27   :  { %s28_s20 = sshll.u32 %s1340_s19, 4  ;;  %s48_s22 = sshll.u32 %s1341_s21, 4  ;;  %s29_s20 = int_to_ptr.vmem [resolvable:$true] %s28_s20  ;;  %s49_s22 = int_to_ptr.vmem [resolvable:$true] %s48_s22 }
  0x28   :  { %s1170_s25 = scalar_lea.hbm %s1556_s0, 1024 }
  0x29   :  { %p1171_p2 = scmp.ne.s32.totalorder %s1556_s0, %s1170_s25  ;;  %p1174_p3 = scmp.lt.u32.totalorder %s1170_s25, %s1556_s0 }
  0x2b   :  { %p1176_p4 = pnand %p1174_p3, %p1171_p2 }
  0x2d   :  { %1179 = shalt.err (!%p1176_p4)
}
  0x2e   :  { %s1180_s3 = scalar_lea.vmem %s29_s20, 1024  ;;  %p1185_p6 = scmp.lt.s32.totalorder %s29_s20, %s29_s20 }
  0x2f   :  { %p1181_p5 = scmp.ne.s32.totalorder %s29_s20, %s1180_s3  ;;  %p1186_p7 = scmp.lt.s32.totalorder %s1180_s3, %s1180_s3 }
  0x31   :  { %p1187_p8 = por %p1186_p7, %p1185_p6 }
  0x33   :  { %p1188_p9 = pnand %p1187_p8, %p1181_p5 }
  0x35   :  { %1191 = shalt.err (!%p1188_p9)
}
  0x36   :  { %31 = dma.hbm_to_vmem [thread:$0]  %s1556_s0, 1024, %s29_s20, [#allocation4]  }
  0x37   :  { %s1192_s13 = scalar_lea.hbm %s1558_s2, 128 }
  0x38   :  { %p1193_p10 = scmp.ne.s32.totalorder %s1558_s2, %s1192_s13  ;;  %p1196_p11 = scmp.lt.u32.totalorder %s1192_s13, %s1558_s2 }
  0x3a   :  { %p1198_p12 = pnand %p1196_p11, %p1193_p10 }
  0x3c   :  { %1201 = shalt.err (!%p1198_p12)
}
  0x3d   :  { %s1202_s21 = scalar_lea.vmem %s49_s22, 128  ;;  %p1207_p0 = scmp.lt.s32.totalorder %s49_s22, %s49_s22 }
  0x3e   :  { %p1203_p13 = scmp.ne.s32.totalorder %s49_s22, %s1202_s21  ;;  %p1208_p1 = scmp.lt.s32.totalorder %s1202_s21, %s1202_s21 }
  0x40   :  { %p1209_p2 = por %p1208_p1, %p1207_p0 }
  0x42   :  { %p1210_p3 = pnand %p1209_p2, %p1203_p13 }
  0x44   :  { %1213 = shalt.err (!%p1210_p3)
}
  0x45   :  { %51 = dma.hbm_to_vmem [thread:$0]  %s1558_s2, 128, %s49_s22, [#allocation7]  }
  0x46   :  { %s1342_s23 = smov [#allocation11]   ;;  %s1343_s25 = smov [#allocation12]  }
  0x47   :  { %s69_s24 = sshll.u32 %s1342_s23, 4  ;;  %s83_s26 = sshll.u32 %s1343_s25, 4  ;;  %s70_s24 = int_to_ptr.vmem [resolvable:$true] %s69_s24  ;;  %s1466_s26 = int_to_ptr.vmem [resolvable:$true] %s83_s26 }
  0x48   :  { %s1214_s29 = scalar_lea.hbm %s1560_s4, 512 }
  0x49   :  { %p1215_p4 = scmp.ne.s32.totalorder %s1560_s4, %s1214_s29  ;;  %p1218_p5 = scmp.lt.u32.totalorder %s1214_s29, %s1560_s4 }
  0x4b   :  { %p1220_p6 = pnand %p1218_p5, %p1215_p4 }
  0x4d   :  { %1223 = shalt.err (!%p1220_p6)
}
  0x4e   :  { %s1224_s2 = scalar_lea.vmem %s70_s24, 512  ;;  %p1229_p8 = scmp.lt.s32.totalorder %s70_s24, %s70_s24 }
  0x4f   :  { %p1225_p7 = scmp.ne.s32.totalorder %s70_s24, %s1224_s2  ;;  %p1230_p9 = scmp.lt.s32.totalorder %s1224_s2, %s1224_s2 }
  0x51   :  { %p1231_p10 = por %p1230_p9, %p1229_p8 }
  0x53   :  { %p1232_p11 = pnand %p1231_p10, %p1225_p7 }
  0x55   :  { %1235 = shalt.err (!%p1232_p11)
}
  0x56   :  { %75 = dma.hbm_to_vmem [thread:$0]  %s1560_s4, 512, %s70_s24, [#allocation10], %s1338_s1, %s1338_s1, %s1339_s14  }
  0x57   :  { %s1236_s17 = scalar_lea.hbm %s1562_s6, 512 }
  0x58   :  { %p1237_p12 = scmp.ne.s32.totalorder %s1562_s6, %s1236_s17  ;;  %p1240_p13 = scmp.lt.u32.totalorder %s1236_s17, %s1562_s6 }
  0x5a   :  { %p1242_p0 = pnand %p1240_p13, %p1237_p12 }
  0x5c   :  { %1245 = shalt.err (!%p1242_p0)
}
  0x5d   :  { %s1246_s20 = scalar_lea.vmem %s1466_s26, 512  ;;  %p1251_p2 = scmp.lt.s32.totalorder %s1466_s26, %s1466_s26 }
  0x5e   :  { %p1247_p1 = scmp.ne.s32.totalorder %s1466_s26, %s1246_s20  ;;  %p1252_p3 = scmp.lt.s32.totalorder %s1246_s20, %s1246_s20 }
  0x60   :  { %p1253_p4 = por %p1252_p3, %p1251_p2 }
  0x62   :  { %p1254_p5 = pnand %p1253_p4, %p1247_p1 }
  0x64   :  { %1257 = shalt.err (!%p1254_p5)
}
  0x65   :  { %89 = dma.hbm_to_vmem [thread:$0]  %s1562_s6, 512, %s1466_s26, [#allocation13], %s1338_s1, %s1338_s1, %s1339_s14  }
  0x66   :  { %1324 = dma.done.wait [#allocation4], 1024  }
  0x67   :  { %1325 = vsyncadd [#allocation4], 4294966272 }
  0x68   :  { %1326 = dma.done.wait [#allocation7], 256  }
  0x69   :  { %1327 = vsyncadd [#allocation7], 4294967040 }
  0x6a   :  { %1328 = dma.done.wait [#allocation10], 16896  }
  0x6b   :  { %1329 = vsyncadd [#allocation10], 4294950400 }
  0x6c   :  { %1330 = dma.done.wait [#allocation13], 512  }
  0x6d   :  { %1331 = vsyncadd [#allocation13], 4294966784  ;;  %v134_v0 = vld [vmem:[#allocation9 + $0x80] sm:$0xff]  ;;  %v135_v1 = vld [vmem:[#allocation9 + $0x88] sm:$0xff]  ;;  %vm1345_vm0 = vmmov 0   ;;  %vm547_vm1 = vcmask 261120  }
  0x6e   :  { %v166_v2 = vld [vmem:[#allocation9 + $0x180] sm:$0xff]  ;;  %v961_v3 = vpack.c.bf16 %v135_v1, %v134_v0  ;;  %v167_v4 = vld [vmem:[#allocation9 + $0x188] sm:$0xff]  ;;  %v136_v11 = vld [vmem:[#allocation9 + $0x90] sm:$0xff]  ;;  %s1347_s14 = smov 64   ;;  %s1348_s24 = smov 32  }
  0x6f   :  { %v118_v5 = vld [vmem:[#allocation9] sm:$0xff]  ;;  %v119_v6 = vld [vmem:[#allocation9 + $0x8] sm:$0xff]  ;;  %v993_v7 = vpack.c.bf16 %v167_v4, %v166_v2  ;;  %v137_v13 = vld [vmem:[#allocation9 + $0x98] sm:$0xff]  ;;  %s1350_s25 = smov [#allocation15]  }
  0x70   :  { %v963_v8 = vpack.c.bf16 %v119_v6, %v118_v5  ;;  %v150_v9 = vld [vmem:[#allocation9 + $0x100] sm:$0xff]  ;;  %v151_v10 = vld [vmem:[#allocation9 + $0x108] sm:$0xff]  ;;  %962 = vmatprep.subr.bf16.mxu0 %v961_v3  ;;  %v168_v14 = vld [vmem:[#allocation9 + $0x190] sm:$0xff]  ;;  %v965_v16 = vpack.c.bf16 %v137_v13, %v136_v11  ;;  %s755_s26 = sshll.u32 %s1350_s25, 4  ;;  %s756_s26 = int_to_ptr.vmem [resolvable:$true] %s755_s26 }
  0x71   :  { %v995_v12 = vpack.c.bf16 %v151_v10, %v150_v9  ;;  %v169_v15 = vld [vmem:[#allocation9 + $0x198] sm:$0xff]  ;;  %994 = vmatprep.subr.bf16.mxu1 %v993_v7  ;;  %v120_v18 = vld [vmem:[#allocation9 + $0x10] sm:$0xff]  ;;  %v138_v23 = vld [vmem:[#allocation9 + $0xa0] sm:$0xff]  ;;  %s1258_s27 = scalar_lea.vmem %s756_s26, 128  ;;  %p1263_p7 = scmp.lt.s32.totalorder %s756_s26, %s756_s26 }
  0x72   :  { %964 = vmatpush3.bf16.msra.mxu0 %v963_v8  ;;  %v997_v17 = vpack.c.bf16 %v169_v15, %v168_v14  ;;  %v121_v19 = vld [vmem:[#allocation9 + $0x18] sm:$0xff]  ;;  %v152_v20 = vld [vmem:[#allocation9 + $0x110] sm:$0xff]  ;;  %v139_v24 = vld [vmem:[#allocation9 + $0xa8] sm:$0xff]  ;;  %p1259_p6 = scmp.ne.s32.totalorder %s756_s26, %s1258_s27  ;;  %p1264_p8 = scmp.lt.s32.totalorder %s1258_s27, %s1258_s27 }
  0x73   :  { %996 = vmatpush3.bf16.msra.mxu1 %v995_v12  ;;  %v967_v21 = vpack.c.bf16 %v121_v19, %v120_v18  ;;  %v153_v22 = vld [vmem:[#allocation9 + $0x118] sm:$0xff]  ;;  %966 = vmatprep.subr.bf16.mxu0 %v965_v16  ;;  %v969_v26 = vpack.c.bf16 %v139_v24, %v138_v23  ;;  %v170_v27 = vld [vmem:[#allocation9 + $0x1a0] sm:$0xff]  ;;  %v171_v28 = vld [vmem:[#allocation9 + $0x1a8] sm:$0xff] }
  0x74   :  { %998 = vmatprep.subr.bf16.mxu1 %v997_v17  ;;  %v999_v25 = vpack.c.bf16 %v153_v22, %v152_v20  ;;  %v122_v29 = vld [vmem:[#allocation9 + $0x20] sm:$0xff]  ;;  %v1001_v30 = vpack.c.bf16 %v171_v28, %v170_v27  ;;  %v123_v31 = vld [vmem:[#allocation9 + $0x28] sm:$0xff]  ;;  %v140_v35 = vld [vmem:[#allocation9 + $0xb0] sm:$0xff]  ;;  %p1265_p9 = por %p1264_p8, %p1263_p7 }
  0x75   :  { %v154_v32 = vld [vmem:[#allocation9 + $0x120] sm:$0xff]  ;;  %v155_v33 = vld [vmem:[#allocation9 + $0x128] sm:$0xff]  ;;  %v971_v34 = vpack.c.bf16 %v123_v31, %v122_v29  ;;  %v141_v36 = vld [vmem:[#allocation9 + $0xb8] sm:$0xff] }
  0x76   :  { %968 = vmatpush3.bf16.msra.mxu0 %v967_v21  ;;  %v172_v37 = vld [vmem:[#allocation9 + $0x1b0] sm:$0xff]  ;;  %v1003_v38 = vpack.c.bf16 %v155_v33, %v154_v32  ;;  %v973_v39 = vpack.c.bf16 %v141_v36, %v140_v35  ;;  %v173_v40 = vld [vmem:[#allocation9 + $0x1b8] sm:$0xff]  ;;  %v142_v46 = vld [vmem:[#allocation9 + $0xc0] sm:$0xff]  ;;  %p1266_p10 = pnand %p1265_p9, %p1259_p6 }
  0x77   :  { %1000 = vmatpush3.bf16.msra.mxu1 %v999_v25  ;;  %970 = vmatprep.subr.bf16.mxu0 %v969_v26  ;;  %v124_v41 = vld [vmem:[#allocation9 + $0x30] sm:$0xff]  ;;  %v125_v42 = vld [vmem:[#allocation9 + $0x38] sm:$0xff]  ;;  %v1005_v43 = vpack.c.bf16 %v173_v40, %v172_v37  ;;  %v143_v47 = vld [vmem:[#allocation9 + $0xc8] sm:$0xff] }
  0x78   :  { %1002 = vmatprep.subr.bf16.mxu1 %v1001_v30  ;;  %v156_v44 = vld [vmem:[#allocation9 + $0x130] sm:$0xff]  ;;  %v157_v45 = vld [vmem:[#allocation9 + $0x138] sm:$0xff]  ;;  %v174_v48 = vld [vmem:[#allocation9 + $0x1c0] sm:$0xff]  ;;  %v975_v50 = vpack.c.bf16 %v125_v42, %v124_v41  ;;  %v977_v52 = vpack.c.bf16 %v143_v47, %v142_v46 }
  0x79   :  { %v175_v49 = vld [vmem:[#allocation9 + $0x1c8] sm:$0xff]  ;;  %v1007_v51 = vpack.c.bf16 %v157_v45, %v156_v44  ;;  %v126_v53 = vld [vmem:[#allocation9 + $0x40] sm:$0xff]  ;;  %v144_v58 = vld [vmem:[#allocation9 + $0xd0] sm:$0xff] }
  0x7a   :  { %972 = vmatpush3.bf16.msra.mxu0 %v971_v34  ;;  %v127_v54 = vld [vmem:[#allocation9 + $0x48] sm:$0xff]  ;;  %v158_v55 = vld [vmem:[#allocation9 + $0x140] sm:$0xff]  ;;  %v1009_v56 = vpack.c.bf16 %v175_v49, %v174_v48  ;;  %v145_v59 = vld [vmem:[#allocation9 + $0xd8] sm:$0xff] }
  0x7b   :  { %1004 = vmatpush3.bf16.msra.mxu1 %v1003_v38  ;;  %974 = vmatprep.subr.bf16.mxu0 %v973_v39  ;;  %v159_v57 = vld [vmem:[#allocation9 + $0x148] sm:$0xff]  ;;  %v176_v60 = vld [vmem:[#allocation9 + $0x1d0] sm:$0xff]  ;;  %v177_v61 = vld [vmem:[#allocation9 + $0x1d8] sm:$0xff]  ;;  %v979_v62 = vpack.c.bf16 %v127_v54, %v126_v53  ;;  %v981_v0 = vpack.c.bf16 %v145_v59, %v144_v58 }
  0x7c   :  { %1006 = vmatprep.subr.bf16.mxu1 %v1005_v43  ;;  %v1011_v63 = vpack.c.bf16 %v159_v57, %v158_v55  ;;  %v128_v1 = vld [vmem:[#allocation9 + $0x50] sm:$0xff]  ;;  %v129_v2 = vld [vmem:[#allocation9 + $0x58] sm:$0xff]  ;;  %v1013_v4 = vpack.c.bf16 %v177_v61, %v176_v60  ;;  %v146_v6 = vld [vmem:[#allocation9 + $0xe0] sm:$0xff] }
  0x7d   :  { %v160_v3 = vld [vmem:[#allocation9 + $0x150] sm:$0xff]  ;;  %v161_v5 = vld [vmem:[#allocation9 + $0x158] sm:$0xff]  ;;  %v147_v7 = vld [vmem:[#allocation9 + $0xe8] sm:$0xff]  ;;  %v983_v10 = vpack.c.bf16 %v129_v2, %v128_v1 }
  0x7e   :  { %976 = vmatpush3.bf16.msra.mxu0 %v975_v50  ;;  %v178_v8 = vld [vmem:[#allocation9 + $0x1e0] sm:$0xff]  ;;  %v179_v9 = vld [vmem:[#allocation9 + $0x1e8] sm:$0xff]  ;;  %v1015_v13 = vpack.c.bf16 %v161_v5, %v160_v3  ;;  %v985_v14 = vpack.c.bf16 %v147_v7, %v146_v6  ;;  %v111_v16 = vld [vmem:[#allocation3 + $0x8] sm:$0xff] }
  0x7f   :  { %1008 = vmatpush3.bf16.msra.mxu1 %v1007_v51  ;;  %978 = vmatprep.subr.bf16.mxu0 %v977_v52  ;;  %v130_v11 = vld [vmem:[#allocation9 + $0x60] sm:$0xff]  ;;  %v131_v12 = vld [vmem:[#allocation9 + $0x68] sm:$0xff]  ;;  %v1017_v18 = vpack.c.bf16 %v179_v9, %v178_v8  ;;  %v148_v20 = vld [vmem:[#allocation9 + $0xf0] sm:$0xff] }
  0x80   :  { %1010 = vmatprep.subr.bf16.mxu1 %v1009_v56  ;;  %v162_v15 = vld [vmem:[#allocation9 + $0x160] sm:$0xff]  ;;  %v113_v17 = vld [vmem:[#allocation3 + $0x18] sm:$0xff]  ;;  %v149_v21 = vld [vmem:[#allocation9 + $0xf8] sm:$0xff]  ;;  %310 = vmatprep.mubr.f32.mxu0 %v111_v16  ;;  %v987_v24 = vpack.c.bf16 %v131_v12, %v130_v11 }
  0x81   :  { %v163_v19 = vld [vmem:[#allocation9 + $0x168] sm:$0xff]  ;;  %v180_v22 = vld [vmem:[#allocation9 + $0x1f0] sm:$0xff]  ;;  %v181_v23 = vld [vmem:[#allocation9 + $0x1f8] sm:$0xff]  ;;  %380 = vmatprep.mubr.f32.mxu1 %v113_v17  ;;  %v989_v26 = vpack.c.bf16 %v149_v21, %v148_v20 }
  0x82   :  { %980 = vmatpush3.bf16.msra.mxu0 %v979_v62  ;;  %v1019_v25 = vpack.c.bf16 %v163_v19, %v162_v15  ;;  %v132_v27 = vld [vmem:[#allocation9 + $0x70] sm:$0xff]  ;;  %v133_v28 = vld [vmem:[#allocation9 + $0x78] sm:$0xff]  ;;  %v1021_v30 = vpack.c.bf16 %v181_v23, %v180_v22  ;;  %v198_v32 = vld [vmem:[#allocation9 + $0x280] sm:$0xff] }
  0x83   :  { %1012 = vmatpush3.bf16.msra.mxu1 %v1011_v63  ;;  %982 = vmatprep.subr.bf16.mxu0 %v981_v0  ;;  %v164_v29 = vld [vmem:[#allocation9 + $0x170] sm:$0xff]  ;;  %v165_v31 = vld [vmem:[#allocation9 + $0x178] sm:$0xff]  ;;  %v199_v33 = vld [vmem:[#allocation9 + $0x288] sm:$0xff]  ;;  %v991_v36 = vpack.c.bf16 %v133_v28, %v132_v27 }
  0x84   :  { %1014 = vmatprep.subr.bf16.mxu1 %v1013_v4  ;;  %v230_v34 = vld [vmem:[#allocation9 + $0x380] sm:$0xff]  ;;  %v231_v35 = vld [vmem:[#allocation9 + $0x388] sm:$0xff]  ;;  %v1023_v37 = vpack.c.bf16 %v165_v31, %v164_v29  ;;  %v1025_v38 = vpack.c.bf16 %v199_v33, %v198_v32  ;;  %v200_v44 = vld [vmem:[#allocation9 + $0x290] sm:$0xff] }
  0x85   :  { %v182_v39 = vld [vmem:[#allocation9 + $0x200] sm:$0xff]  ;;  %v183_v40 = vld [vmem:[#allocation9 + $0x208] sm:$0xff]  ;;  %v1057_v42 = vpack.c.bf16 %v231_v35, %v230_v34  ;;  %v201_v45 = vld [vmem:[#allocation9 + $0x298] sm:$0xff] }
  0x86   :  { %984 = vmatpush3.bf16.msra.mxu0 %v983_v10  ;;  %v214_v41 = vld [vmem:[#allocation9 + $0x300] sm:$0xff]  ;;  %v215_v43 = vld [vmem:[#allocation9 + $0x308] sm:$0xff]  ;;  %v232_v46 = vld [vmem:[#allocation9 + $0x390] sm:$0xff]  ;;  %v1027_v50 = vpack.c.bf16 %v183_v40, %v182_v39  ;;  %v1029_v52 = vpack.c.bf16 %v201_v45, %v200_v44 }
  0x87   :  { %1016 = vmatpush3.bf16.msra.mxu1 %v1015_v13  ;;  %986 = vmatprep.subr.bf16.mxu0 %v985_v14  ;;  %v233_v47 = vld [vmem:[#allocation9 + $0x398] sm:$0xff]  ;;  %v110_v48 = vld [vmem:[#allocation3] sm:$0xff]  ;;  %v112_v49 = vld [vmem:[#allocation3 + $0x10] sm:$0xff]  ;;  %v1059_v51 = vpack.c.bf16 %v215_v43, %v214_v41 }
  0x88   :  { %1018 = vmatprep.subr.bf16.mxu1 %v1017_v18  ;;  %v184_v53 = vld [vmem:[#allocation9 + $0x210] sm:$0xff]  ;;  %v185_v54 = vld [vmem:[#allocation9 + $0x218] sm:$0xff]  ;;  %v1061_v56 = vpack.c.bf16 %v233_v47, %v232_v46  ;;  %v202_v58 = vld [vmem:[#allocation9 + $0x2a0] sm:$0xff] }
  0x89   :  { %v216_v55 = vld [vmem:[#allocation9 + $0x310] sm:$0xff]  ;;  %v217_v57 = vld [vmem:[#allocation9 + $0x318] sm:$0xff]  ;;  %v203_v59 = vld [vmem:[#allocation9 + $0x2a8] sm:$0xff]  ;;  %v1031_v62 = vpack.c.bf16 %v185_v54, %v184_v53 }
  0x8a   :  { %988 = vmatpush3.bf16.msra.mxu0 %v987_v24  ;;  %v234_v60 = vld [vmem:[#allocation9 + $0x3a0] sm:$0xff]  ;;  %v235_v61 = vld [vmem:[#allocation9 + $0x3a8] sm:$0xff]  ;;  %v1063_v63 = vpack.c.bf16 %v217_v57, %v216_v55  ;;  %v1033_v0 = vpack.c.bf16 %v203_v59, %v202_v58  ;;  %v204_v6 = vld [vmem:[#allocation9 + $0x2b0] sm:$0xff] }
  0x8b   :  { %1020 = vmatpush3.bf16.msra.mxu1 %v1019_v25  ;;  %990 = vmatprep.subr.bf16.mxu0 %v989_v26  ;;  %v186_v1 = vld [vmem:[#allocation9 + $0x220] sm:$0xff]  ;;  %v187_v2 = vld [vmem:[#allocation9 + $0x228] sm:$0xff]  ;;  %v1065_v4 = vpack.c.bf16 %v235_v61, %v234_v60  ;;  %v205_v7 = vld [vmem:[#allocation9 + $0x2b8] sm:$0xff] }
  0x8c   :  { %1022 = vmatprep.subr.bf16.mxu1 %v1021_v30  ;;  %v218_v3 = vld [vmem:[#allocation9 + $0x320] sm:$0xff]  ;;  %v219_v5 = vld [vmem:[#allocation9 + $0x328] sm:$0xff]  ;;  %v236_v8 = vld [vmem:[#allocation9 + $0x3b0] sm:$0xff]  ;;  %v1035_v10 = vpack.c.bf16 %v187_v2, %v186_v1  ;;  %v1037_v12 = vpack.c.bf16 %v205_v7, %v204_v6 }
  0x8d   :  { %v237_v9 = vld [vmem:[#allocation9 + $0x3b8] sm:$0xff]  ;;  %v1067_v11 = vpack.c.bf16 %v219_v5, %v218_v3  ;;  %v188_v13 = vld [vmem:[#allocation9 + $0x230] sm:$0xff]  ;;  %v206_v18 = vld [vmem:[#allocation9 + $0x2c0] sm:$0xff] }
  0x8e   :  { %992 = vmatpush3.bf16.msra.mxu0 %v991_v36  ;;  %v189_v14 = vld [vmem:[#allocation9 + $0x238] sm:$0xff]  ;;  %v220_v15 = vld [vmem:[#allocation9 + $0x330] sm:$0xff]  ;;  %v1069_v16 = vpack.c.bf16 %v237_v9, %v236_v8  ;;  %v207_v19 = vld [vmem:[#allocation9 + $0x2c8] sm:$0xff] }
  0x8f   :  { %1024 = vmatpush3.bf16.msra.mxu1 %v1023_v37  ;;  %1026 = vmatprep.subr.bf16.mxu0 %v1025_v38  ;;  %v221_v17 = vld [vmem:[#allocation9 + $0x338] sm:$0xff]  ;;  %v238_v20 = vld [vmem:[#allocation9 + $0x3c0] sm:$0xff]  ;;  %v239_v21 = vld [vmem:[#allocation9 + $0x3c8] sm:$0xff]  ;;  %v1039_v22 = vpack.c.bf16 %v189_v14, %v188_v13  ;;  %v1041_v26 = vpack.c.bf16 %v207_v19, %v206_v18 }
  0x90   :  { %1058 = vmatprep.subr.bf16.mxu1 %v1057_v42  ;;  %v115_v23 = vld [vmem:[#allocation3 + $0x28] sm:$0xff]  ;;  %v117_v24 = vld [vmem:[#allocation3 + $0x38] sm:$0xff]  ;;  %v1071_v25 = vpack.c.bf16 %v221_v17, %v220_v15  ;;  %v190_v27 = vld [vmem:[#allocation9 + $0x240] sm:$0xff]  ;;  %v1073_v30 = vpack.c.bf16 %v239_v21, %v238_v20  ;;  %v1346_v15 = vmov 0.0  }
  0x91   :  { %311 = vmatmul.mubr.f32.vlgmr.msra.gmra.mrb[0].mxu0 %v110_v48  ;;  %v191_v28 = vld [vmem:[#allocation9 + $0x248] sm:$0xff]  ;;  %v222_v29 = vld [vmem:[#allocation9 + $0x340] sm:$0xff]  ;;  %v208_v32 = vld [vmem:[#allocation9 + $0x2d0] sm:$0xff] }
  0x92   :  { %381 = vmatmul.mubr.f32.vlgmr.msra.gmra.mrb[0].mxu1 %v112_v49  ;;  %1028 = vmatpush3.bf16.msra.mxu0 %v1027_v50  ;;  %v223_v31 = vld [vmem:[#allocation9 + $0x348] sm:$0xff]  ;;  %v209_v33 = vld [vmem:[#allocation9 + $0x2d8] sm:$0xff]  ;;  %v240_v34 = vld [vmem:[#allocation9 + $0x3d0] sm:$0xff]  ;;  %v1043_v36 = vpack.c.bf16 %v191_v28, %v190_v27 }
  0x93   :  { %1060 = vmatpush3.bf16.msra.mxu1 %v1059_v51  ;;  %1030 = vmatprep.subr.bf16.mxu0 %v1029_v52  ;;  %v241_v35 = vld [vmem:[#allocation9 + $0x3d8] sm:$0xff]  ;;  %v1075_v37 = vpack.c.bf16 %v223_v31, %v222_v29  ;;  %v1045_v38 = vpack.c.bf16 %v209_v33, %v208_v32  ;;  %v192_v39 = vld [vmem:[#allocation9 + $0x250] sm:$0xff]  ;;  %v210_v44 = vld [vmem:[#allocation9 + $0x2e0] sm:$0xff] }
  0x94   :  { %1062 = vmatprep.subr.bf16.mxu1 %v1061_v56  ;;  %450 = vmatprep.mubr.f32.mxu0 %v115_v23  ;;  %v193_v40 = vld [vmem:[#allocation9 + $0x258] sm:$0xff]  ;;  %v224_v41 = vld [vmem:[#allocation9 + $0x350] sm:$0xff]  ;;  %v1077_v42 = vpack.c.bf16 %v241_v35, %v240_v34  ;;  %v211_v45 = vld [vmem:[#allocation9 + $0x2e8] sm:$0xff] }
  0x95   :  { %520 = vmatprep.mubr.f32.mxu1 %v117_v24  ;;  %v225_v43 = vld [vmem:[#allocation9 + $0x358] sm:$0xff]  ;;  %v242_v46 = vld [vmem:[#allocation9 + $0x3e0] sm:$0xff]  ;;  %v243_v47 = vld [vmem:[#allocation9 + $0x3e8] sm:$0xff]  ;;  %v1047_v48 = vpack.c.bf16 %v193_v40, %v192_v39  ;;  %v1049_v50 = vpack.c.bf16 %v211_v45, %v210_v44 }
  0x96   :  { %1032 = vmatpush3.bf16.msra.mxu0 %v1031_v62  ;;  %v1079_v49 = vpack.c.bf16 %v225_v43, %v224_v41  ;;  %v194_v51 = vld [vmem:[#allocation9 + $0x260] sm:$0xff]  ;;  %v195_v52 = vld [vmem:[#allocation9 + $0x268] sm:$0xff]  ;;  %v1081_v54 = vpack.c.bf16 %v243_v47, %v242_v46  ;;  %v212_v56 = vld [vmem:[#allocation9 + $0x2f0] sm:$0xff] }
  0x97   :  { %1064 = vmatpush3.bf16.msra.mxu1 %v1063_v63  ;;  %1034 = vmatprep.subr.bf16.mxu0 %v1033_v0  ;;  %v226_v53 = vld [vmem:[#allocation9 + $0x360] sm:$0xff]  ;;  %v227_v55 = vld [vmem:[#allocation9 + $0x368] sm:$0xff]  ;;  %v213_v57 = vld [vmem:[#allocation9 + $0x2f8] sm:$0xff]  ;;  %v1051_v60 = vpack.c.bf16 %v195_v52, %v194_v51 }
  0x98   :  { %1066 = vmatprep.subr.bf16.mxu1 %v1065_v4  ;;  %v244_v58 = vld [vmem:[#allocation9 + $0x3f0] sm:$0xff]  ;;  %v245_v59 = vld [vmem:[#allocation9 + $0x3f8] sm:$0xff]  ;;  %v1083_v61 = vpack.c.bf16 %v227_v55, %v226_v53  ;;  %v1053_v62 = vpack.c.bf16 %v213_v57, %v212_v56  ;;  %v535_v6 = vld [vmem:[#allocation11] sm:$0xff] }
  0x99   :  { %v196_v63 = vld [vmem:[#allocation9 + $0x270] sm:$0xff]  ;;  %v197_v0 = vld [vmem:[#allocation9 + $0x278] sm:$0xff]  ;;  %v1085_v1 = vpack.c.bf16 %v245_v59, %v244_v58  ;;  %v536_v7 = vld [vmem:[#allocation11 + $0x8] sm:$0xff] }
  0x9a   :  { %1036 = vmatpush3.bf16.msra.mxu0 %v1035_v10  ;;  %v228_v2 = vld [vmem:[#allocation9 + $0x370] sm:$0xff]  ;;  %v229_v3 = vld [vmem:[#allocation9 + $0x378] sm:$0xff]  ;;  %v1055_v4 = vpack.c.bf16 %v197_v0, %v196_v63  ;;  %v1090_v9 = vpack.c.bf16 %v536_v7, %v535_v6  ;;  %v1344_v10 = vmov 0.0|0.0  }
  0x9b   :  { %1068 = vmatpush3.bf16.msra.mxu1 %v1067_v11  ;;  %1038 = vmatprep.subr.bf16.mxu0 %v1037_v12  ;;  %v1087_v5 = vpack.c.bf16 %v229_v3, %v228_v2  ;;  %v114_v8 = vld [vmem:[#allocation3 + $0x20] sm:$0xff]  ;;  %v116_v11 = vld [vmem:[#allocation3 + $0x30] sm:$0xff]  ;;  %v538_v13 = vld [vmem:[#allocation11 + $0x18] sm:$0xff] }
  0x9c   :  { %1070 = vmatprep.subr.bf16.mxu1 %v1069_v16  ;;  %v537_v12 = vld [vmem:[#allocation11 + $0x10] sm:$0xff]  ;;  %v542_v53 = vld [vmem:[#allocation12 + $0x18] sm:$0xff] }
  0x9d   :  { %v1093_v14 = vpack.c.bf16 %v538_v13, %v537_v12  ;;  %v544_v16 = vld [vmem:[#allocation6] sm:$0xff] }
  0x9e   :  { %1040 = vmatpush3.bf16.msra.mxu0 %v1039_v22  ;;  %v784_v31 = vld [vmem:[%s1561_s5] ss:$0 sm:$0xff]  ;;  %s1349_s5 = smov 96  }
  0x9f   :  { %1072 = vmatpush3.bf16.msra.mxu1 %v1071_v25  ;;  %1042 = vmatprep.subr.bf16.mxu0 %v1041_v26  ;;  %v541_v51 = vld [vmem:[#allocation12 + $0x10] sm:$0xff] }
  0xa0   :  { %1074 = vmatprep.subr.bf16.mxu1 %v1073_v30 }
  0xa2   :  { %1044 = vmatpush3.bf16.msra.mxu0 %v1043_v36 }
  0xa3   :  { %1076 = vmatpush3.bf16.msra.mxu1 %v1075_v37  ;;  %1046 = vmatprep.subr.bf16.mxu0 %v1045_v38  ;;  %v545_v38 = vld [vmem:[#allocation8] sm:$0xff] }
  0xa4   :  { %1078 = vmatprep.subr.bf16.mxu1 %v1077_v42 }
  0xa6   :  { %1048 = vmatpush3.bf16.msra.mxu0 %v1047_v48 }
  0xa7   :  { %1080 = vmatpush3.bf16.msra.mxu1 %v1079_v49  ;;  %1050 = vmatprep.subr.bf16.mxu0 %v1049_v50  ;;  %v539_v49 = vld [vmem:[#allocation12] sm:$0xff]  ;;  %v540_v50 = vld [vmem:[#allocation12 + $0x8] sm:$0xff] }
  0xa8   :  { %1082 = vmatprep.subr.bf16.mxu1 %v1081_v54  ;;  %v1096_v52 = vpack.c.bf16 %v540_v50, %v539_v49  ;;  %v1099_v54 = vpack.c.bf16 %v542_v53, %v541_v51 }
  0xaa   :  { %1052 = vmatpush3.bf16.msra.mxu0 %v1051_v60 }
  0xab   :  { %1084 = vmatpush3.bf16.msra.mxu1 %v1083_v61  ;;  %1054 = vmatprep.subr.bf16.mxu0 %v1053_v62 }
  0xac   :  { %1086 = vmatprep.subr.bf16.mxu1 %v1085_v1 }
  0xae   :  { %1056 = vmatpush3.bf16.msra.mxu0 %v1055_v4 }
  0xaf   :  { %1088 = vmatpush3.bf16.msra.mxu1 %v1087_v5  ;;  %1089 = vmatprep.subr.bf16.mxu0 %v1344_v10 }
  0xb0   :  { %1095 = vmatprep.subr.bf16.mxu1 %v1344_v10 }
  0xb1   :  { %451 = vmatmul.mubr.f32.vlgmr.msra.gmra.mrb[2].mxu0 %v114_v8 }
  0xb2   :  { %521 = vmatmul.mubr.f32.vlgmr.msra.gmra.mrb[2].mxu1 %v116_v11  ;;  %1091 = vmatpush3.bf16.msra.mxu0 %v1090_v9 }
  0xb3   :  { %1092 = vmatprep.subr.bf16.mxu0 %v1344_v10  ;;  %947 = vmatprep.mubr.msk.f32.mxu0 %vm1345_vm0, %v1346_v15 }
  0xb4   :  { %958 = vmatprep.mubr.msk.f32.mxu1 %vm1345_vm0, %v1346_v15  ;;  %1097 = vmatpush3.bf16.msra.mxu1 %v1096_v52 }
  0xb5   :  { %1098 = vmatprep.subr.bf16.mxu1 %v1344_v10 }
  0xb6   :  { %1094 = vmatpush3.bf16.msra.mxu0 %v1093_v14 }
  0xb8   :  { %1100 = vmatpush3.bf16.msra.mxu1 %v1099_v54 }
  0xb9   :  { %948 = vmatmul.mubr.msk.f32.vlgmr.msra.gmra.mrb[4].mxu0 %vm547_vm1, %v544_v16 }
 0x164   :  { %v821_v17 = vpop.f32.mrb[0].mxu0 }
 0x165   :  { %v856_v18 = vpop.f32.mrb[0].mxu1  ;;  %v822_v19 = vpop.f32.mrb[1].mxu0 }
 0x166   :  { %v823_v20 = vadd.f32 %v822_v19, %v821_v17  ;;  %v857_v21 = vpop.f32.mrb[1].mxu1 }
 0x167   :  { %v858_v22 = vadd.f32 %v857_v21, %v856_v18 }
 0x169   :  { %v383_v23 = vadd.f32 %v858_v22, %v823_v20 }
 0x184   :  { %v891_v24 = vpop.f32.mrb[2].mxu0 }
 0x185   :  { %v892_v25 = vpop.f32.mrb[3].mxu0  ;;  %v926_v26 = vpop.f32.mrb[2].mxu1 }
 0x186   :  { %v893_v27 = vadd.f32 %v892_v25, %v891_v24  ;;  %v927_v28 = vpop.f32.mrb[3].mxu1 }
 0x187   :  { %v928_v29 = vadd.f32 %v927_v28, %v926_v26 }
 0x188   :  { %v453_v30 = vadd.f32 %v893_v27, %v383_v23 }
 0x18a   :  { %v523_v32 = vadd.f32 %v928_v29, %v453_v30 }
 0x18c   :  { %v533_v33 = vadd.f32 %v784_v31, %v523_v32  ;;  %v617_v34 = vpop.f32.mrb[4].mxu0 }
 0x18d   :  { %v949_v35 = vpop.f32.mrb[5].mxu0 }
 0x18e   :  { %v621_v36 = vadd.f32 %v617_v34, %v533_v33 }
 0x190   :  { %1118 = vtanh.f32 %v621_v36  ;;  %v786_v39 = vmul.f32 -1.442695, %v621_v36 }
 0x192   :  { %1120 = vpow2.f32 %v786_v39 }
 0x19a   :  { %v1119_v37 = vpop.eup %1118 }
 0x19b   :  { %635 = vrot.lane.b32.xlu0 %v1119_v37, %s1347_s14 }
 0x19c   :  { %v1121_v40 = vpop.eup %1120 }
 0x19d   :  { %v625_v41 = vadd.f32 1.0, %v1121_v40 }
 0x19f   :  { %630 = vrot.lane.b32.xlu0 %v545_v38, %s1348_s24  ;;  %1122 = vrcp.f32 %v625_v41 }
 0x1a9   :  { %v1123_v42 = vpop.eup %1122 }
 0x20d   :  { %v636_v43 = vpop.permute.xlu0 %635 }
 0x20e   :  { %v638_v44 = vmul.f32 %v1123_v42, %v636_v43 }
 0x210   :  { %640 = vrot.lane.b32.xlu1 %v638_v44, %s1348_s24 }
 0x211   :  { %v631_v45 = vpop.permute.xlu0 %630 }
 0x212   :  { %v633_v46 = vmul.f32 %v1123_v42, %v631_v45 }
 0x282   :  { %v641_v47 = vpop.permute.xlu1 %640 }
 0x283   :  { %v643_v48 = vadd.f32 %v641_v47, %v633_v46 }
 0x285   :  { %1124 = vtanh.f32 %v643_v48 }
 0x28f   :  { %v1125_v55 = vpop.eup %1124 }
 0x290   :  { %646 = vrot.lane.b32.xlu1 %v1125_v55, %s1347_s14 }
 0x294   :  { %735 = vrot.lane.b32.xlu1 %v643_v48, %s1349_s5 }
 0x302   :  { %v647_v56 = vpop.permute.xlu1 %646 }
 0x303   :  { %v649_v57 = vmul.f32 %v1123_v42, %v647_v56 }
 0x305   :  { %657 = vrot.lane.b32.xlu0 %v649_v57, %s1348_s24 }
 0x306   :  { %v736_v58 = vpop.permute.xlu1 %735 }
 0x307   :  { %738 = vst.msk [vmem:[#allocation17] sm:$0xff] %vm547_vm1, %v736_v58 }
 0x377   :  { %v658_v59 = vpop.permute.xlu0 %657 }
 0x378   :  { %733 = vst.msk [vmem:[#allocation15] sm:$0xff] %vm547_vm1, %v658_v59  ;;  %959 = vmatmul.mubr.msk.f32.vlgmr.msra.gmra.mrb[4].mxu1 %vm547_vm1, %v658_v59 }
 0x379   :  { %1269 = shalt.err (!%p1266_p10)
}
 0x37a   :  { %s1270_s3 = scalar_lea.hbm %s1565_s9, 128 }
 0x37b   :  { %p1271_p11 = scmp.ne.s32.totalorder %s1565_s9, %s1270_s3  ;;  %p1274_p12 = scmp.lt.u32.totalorder %s1270_s3, %s1565_s9 }
 0x37d   :  { %p1276_p13 = pnand %p1274_p12, %p1271_p11 }
 0x37f   :  { %1279 = shalt.err (!%p1276_p13)
}
 0x380   :  { %758 = dma.vmem_to_hbm [thread:$0]  %s756_s26, 128, %s1565_s9, [#allocation16]  }
 0x381   :  { %s1351_s13 = smov [#allocation17]  }
 0x382   :  { %s765_s15 = sshll.u32 %s1351_s13, 4  ;;  %s766_s15 = int_to_ptr.vmem [resolvable:$true] %s765_s15 }
 0x383   :  { %s1280_s17 = scalar_lea.vmem %s766_s15, 128  ;;  %p1285_p1 = scmp.lt.s32.totalorder %s766_s15, %s766_s15 }
 0x384   :  { %p1281_p0 = scmp.ne.s32.totalorder %s766_s15, %s1280_s17  ;;  %p1286_p2 = scmp.lt.s32.totalorder %s1280_s17, %s1280_s17 }
 0x386   :  { %p1287_p3 = por %p1286_p2, %p1285_p1 }
 0x388   :  { %p1288_p4 = pnand %p1287_p3, %p1281_p0 }
 0x38a   :  { %1291 = shalt.err (!%p1288_p4)
}
 0x38b   :  { %s1292_s21 = scalar_lea.hbm %s1566_s10, 128 }
 0x38c   :  { %p1293_p5 = scmp.ne.s32.totalorder %s1566_s10, %s1292_s21  ;;  %p1296_p6 = scmp.lt.u32.totalorder %s1292_s21, %s1566_s10 }
 0x38e   :  { %p1298_p7 = pnand %p1296_p6, %p1293_p5 }
 0x390   :  { %1301 = shalt.err (!%p1298_p7)
}
 0x391   :  { %768 = dma.vmem_to_hbm [thread:$0]  %s766_s15, 128, %s1566_s10, [#allocation16]   ;;  %v787_v60 = vld [vmem:[%s1563_s7] ss:$0 sm:$0xff] }
 0x392   :  { %s1352_s24 = smov [#allocation14]  }
 0x393   :  { %s745_s5 = sshll.u32 %s1352_s24, 4  ;;  %s746_s5 = int_to_ptr.vmem [resolvable:$true] %s745_s5 }
 0x394   :  { %s1302_s25 = scalar_lea.vmem %s746_s5, 128  ;;  %p1307_p9 = scmp.lt.s32.totalorder %s746_s5, %s746_s5 }
 0x395   :  { %p1303_p8 = scmp.ne.s32.totalorder %s746_s5, %s1302_s25  ;;  %p1308_p10 = scmp.lt.s32.totalorder %s1302_s25, %s1302_s25 }
 0x397   :  { %p1309_p11 = por %p1308_p10, %p1307_p9 }
 0x399   :  { %p1310_p12 = pnand %p1309_p11, %p1303_p8 }
 0x44b   :  { %v727_v61 = vpop.f32.mrb[4].mxu1 }
 0x44c   :  { %v728_v62 = vadd.f32 %v787_v60, %v727_v61  ;;  %v960_v63 = vpop.f32.mrb[5].mxu1 }
 0x44e   :  { %731 = vst [vmem:[#allocation14] sm:$0xff] %v728_v62 }
 0x44f   :  { %1313 = shalt.err (!%p1310_p12)
}
 0x450   :  { %s1314_s27 = scalar_lea.hbm %s1564_s8, 128 }
 0x451   :  { %p1315_p13 = scmp.ne.s32.totalorder %s1564_s8, %s1314_s27  ;;  %p1318_p0 = scmp.lt.u32.totalorder %s1314_s27, %s1564_s8 }
 0x453   :  { %p1320_p1 = pnand %p1318_p0, %p1315_p13 }
 0x455   :  { %1323 = shalt.err (!%p1320_p1)
}
 0x456   :  { %748 = dma.vmem_to_hbm [thread:$0]  %s746_s5, 128, %s1564_s8, [#allocation5]  }
 0x457   :  { %1332 = dma.done.wait [#allocation5], 128  }
 0x458   :  { %1333 = vsyncadd [#allocation5], 4294967168 }
 0x459   :  { %1334 = dma.done.wait [#allocation16], 256  }
 0x45a   :  { %1335 = vsyncadd [#allocation16], 4294967040 }
 0x45b   :  { %778 = vsyncpa [#allocation4], 1 }
 0x45c   :  { %779 = vsyncpa [#allocation7], 1 }
 0x45d   :  { %780 = vsyncpa [#allocation10], 1 }
 0x45e   :  { %781 = vsyncpa [#allocation13], 1 }
 0x45f   :  { %782 = vsyncpa [#allocation5], 1 }
 0x460   :  { %783 = vsyncpa [#allocation16], 1 }

</bundles_post_ra>
